<compile_context>
chip_gen: v7x
topology: tpu7x:2x2x1
jax: 0.10.0
libtpu: 0.0.40
codegen_flags: <defaults>
</compile_context>

<pallas_src>
import functools

import jax
import jax.numpy as jnp
from jax import lax
from jax.experimental import pallas as pl
from jax.experimental.pallas import tpu as pltpu


def _round_up(x, m):
    return ((x + m - 1) // m) * m


def _padded_vmem_bytes(rows, cols, itemsize=4):
    # f32 VMEM tiles are (8 sublane, 128 lane); account for layout padding.
    return _round_up(rows, 8) * _round_up(cols, 128) * itemsize


def _pick_chunk(tb, target):
    for c in (target, 256, 128, 64, 32, 16, 8):
        if c <= tb and tb % c == 0:
            return c
    return tb


# ---------------------------------------------------------------------------
# Path A: embedding tables resident in VMEM (no per-row HBM DMAs).
# ---------------------------------------------------------------------------
def kmf_vmem_kernel(users_ref, items_ref,            # scalar-prefetch (SMEM) indices
                    bias_ref,                        # (tb, 1) pre-summed bias
                    u_tab_ref, i_tab_ref,            # full tables, resident in VMEM
                    pred_ref, u_out_ref, i_out_ref,  # (tb,1), (tb,D), (tb,D)
                    *, tb, max_score, unroll):
    base = pl.program_id(0) * tb

    # Fused gather: VMEM -> VMEM row copies.  The output blocks double as the
    # gather buffers (the module returns the gathered rows).
    def gather(r, carry):
        uid = users_ref[base + r]
        iid = items_ref[base + r]
        u_out_ref[pl.ds(r, 1), :] = u_tab_ref[pl.ds(uid, 1), :]
        i_out_ref[pl.ds(r, 1), :] = i_tab_ref[pl.ds(iid, 1), :]
        return carry

    lax.fori_loop(0, tb, gather, None, unroll=unroll)

    u = u_out_ref[...]                                   # (tb, D) f32
    it = i_out_ref[...]                                  # (tb, D) f32
    dot = jnp.sum(u * it, axis=1, keepdims=True)         # (tb, 1)
    logit = bias_ref[...] + dot
    pred_ref[...] = (max_score * jax.nn.sigmoid(logit)).astype(pred_ref.dtype)


# ---------------------------------------------------------------------------
# Path B: tables in HBM, chunked DMA gather overlapped with compute.
# ---------------------------------------------------------------------------
def kmf_hbm_kernel(users_ref, items_ref,              # scalar-prefetch (SMEM) indices
                   bias_ref,                          # (tb, 1) pre-summed bias
                   u_tab_ref, i_tab_ref,              # embedding tables, raw HBM refs
                   pred_ref, u_out_ref, i_out_ref,    # (tb,1), (tb,D), (tb,D)
                   sem,                               # DMA sems: (2 tables, 2 parities)
                   *, tb, chunk, max_score, unroll):
    base = pl.program_id(0) * tb
    n_chunks = tb // chunk

    def issue_chunk(off, par):
        # Unrolled issue: SMEM index loads (scalar slots) co-issue with
        # descriptor pushes (vector-misc slot).
        def body(r, carry):
            row = off + r
            uid = users_ref[base + row]
            iid = items_ref[base + row]
            pltpu.make_async_copy(u_tab_ref.at[pl.ds(uid, 1), :],
                                  u_out_ref.at[pl.ds(row, 1), :],
                                  sem.at[0, par]).start()
            pltpu.make_async_copy(i_tab_ref.at[pl.ds(iid, 1), :],
                                  i_out_ref.at[pl.ds(row, 1), :],
                                  sem.at[1, par]).start()
            return carry

        lax.fori_loop(0, chunk, body, None, unroll=unroll)

    def wait_chunk(off, par):
        # ONE bulk wait per table: the (chunk, D) descriptor's byte count
        # equals the sum of the `chunk` row copies signaled on that semaphore.
        # Only the shape matters for the wait amount, so src == dst slice.
        u_dst = u_out_ref.at[pl.ds(off, chunk), :]
        i_dst = i_out_ref.at[pl.ds(off, chunk), :]
        pltpu.make_async_copy(u_dst, u_dst, sem.at[0, par]).wait()
        pltpu.make_async_copy(i_dst, i_dst, sem.at[1, par]).wait()

    def compute_chunk(off):
        u = u_out_ref[pl.ds(off, chunk), :]
        it = i_out_ref[pl.ds(off, chunk), :]
        dot = jnp.sum(u * it, axis=1, keepdims=True)      # (chunk, 1)
        logit = bias_ref[pl.ds(off, chunk), :] + dot
        pred_ref[pl.ds(off, chunk), :] = (
            max_score * jax.nn.sigmoid(logit)).astype(pred_ref.dtype)

    # One-chunk DMA lookahead: chunk c+1's gather overlaps chunk c's wait and
    # dot/sigmoid.  Chunk offsets are static (Python loop); at most one chunk
    # per (table, parity) semaphore is ever outstanding.
    issue_chunk(0, 0)
    for c in range(n_chunks):
        if c + 1 < n_chunks:
            issue_chunk((c + 1) * chunk, (c + 1) % 2)
        wait_chunk(c * chunk, c % 2)
        compute_chunk(c * chunk)


# ---------------------------------------------------------------------------
# Host-side wrapper.
# ---------------------------------------------------------------------------
def init_kmf_params(key, n_users, n_items, emb_dim):
    k_u, k_i = jax.random.split(key)
    return {
        "user_emb": 0.1 * jax.random.normal(k_u, (n_users, emb_dim), jnp.float32),
        "item_emb": 0.1 * jax.random.normal(k_i, (n_items, emb_dim), jnp.float32),
        "user_bias": jnp.zeros((n_users,), jnp.float32),
        "item_bias": jnp.zeros((n_items,), jnp.float32),
        "global_bias": jnp.zeros((1,), jnp.float32),
    }


def kmf_forward(users, items, params, max_score, *, block_b=2048,
                table_memory="auto", vmem_table_budget=16 * 1024 * 1024,
                chunk_rows=256, issue_unroll=8):
    user_emb = params["user_emb"].astype(jnp.float32)
    item_emb = params["item_emb"].astype(jnp.float32)
    n_users, D = user_emb.shape
    n_items = item_emb.shape[0]
    B = users.shape[0]

    # Tiny per-example bias gathers (returned by the module) + global-bias fold.
    u_b = jnp.take(params["user_bias"], users).astype(jnp.float32)      # (B,)
    i_b = jnp.take(params["item_bias"], items).astype(jnp.float32)      # (B,)
    bias = (params["global_bias"].astype(jnp.float32)[0] + u_b + i_b)[:, None]

    # Batch tile: multiple of 8 (sublane); keep the grid even (>= 2 steps) so
    # dimension_semantics=("parallel",) actually shards both TCs on v7x.
    tb = min(block_b, _round_up(pl.cdiv(B, 2), 8))
    B_pad = _round_up(B, 2 * tb)
    pad = B_pad - B
    users_p = jnp.pad(users.astype(jnp.int32), (0, pad))   # pad index 0 -- safe gather
    items_p = jnp.pad(items.astype(jnp.int32), (0, pad))
    bias_p = jnp.pad(bias, ((0, pad), (0, 0)))
    grid = (B_pad // tb,)

    # Padding-aware VMEM accounting (lane dim pads to 128, sublane to 8).
    Dp = _round_up(D, 128)
    table_vmem = _padded_vmem_bytes(n_users, D) + _padded_vmem_bytes(n_items, D)
    io_vmem = 2 * (2 * tb * Dp * 4 + 2 * tb * 128 * 4)     # double-buffered blocks
    use_vmem_tables = (table_memory == "vmem"
                       or (table_memory == "auto" and table_vmem <= vmem_table_budget))

    bias_spec = pl.BlockSpec((tb, 1), lambda i, u, it: (i, 0))
    out_specs = (
        pl.BlockSpec((tb, 1), lambda i, u, it: (i, 0)),    # pred
        pl.BlockSpec((tb, D), lambda i, u, it: (i, 0)),    # users_emb
        pl.BlockSpec((tb, D), lambda i, u, it: (i, 0)),    # items_emb
    )
    out_shape = (
        jax.ShapeDtypeStruct((B_pad, 1), jnp.float32),
        jax.ShapeDtypeStruct((B_pad, D), jnp.float32),
        jax.ShapeDtypeStruct((B_pad, D), jnp.float32),
    )

    if use_vmem_tables:
        kernel = functools.partial(kmf_vmem_kernel, tb=tb,
                                   max_score=float(max_score), unroll=issue_unroll)
        in_specs = [
            bias_spec,
            # Constant index map: table is loaded once and stays resident
            # across the whole batch grid.
            pl.BlockSpec((n_users, D), lambda i, u, it: (0, 0)),
            pl.BlockSpec((n_items, D), lambda i, u, it: (0, 0)),
        ]
        scratch_shapes = []
        vmem_limit = 2 * table_vmem + io_vmem + (8 << 20)
    else:
        chunk = _pick_chunk(tb, chunk_rows)
        kernel = functools.partial(kmf_hbm_kernel, tb=tb, chunk=chunk,
                                   max_score=float(max_score), unroll=issue_unroll)
        in_specs = [
            bias_spec,
            pl.BlockSpec(memory_space=pl.ANY),             # user table (HBM)
            pl.BlockSpec(memory_space=pl.ANY),             # item table (HBM)
        ]
        scratch_shapes = [pltpu.SemaphoreType.DMA((2, 2))]
        vmem_limit = io_vmem + (8 << 20)
    vmem_limit = int(max(vmem_limit, 16 << 20))

    pred, u_gath, i_gath = pl.pallas_call(
        kernel,
        out_shape=out_shape,
        grid_spec=pltpu.PrefetchScalarGridSpec(
            num_scalar_prefetch=2,                         # users, items -> SMEM
            grid=grid,
            in_specs=in_specs,
            out_specs=out_specs,
            scratch_shapes=scratch_shapes),
        compiler_params=pltpu.CompilerParams(
            dimension_semantics=("parallel",),
            vmem_limit_bytes=vmem_limit),
    )(users_p, items_p, bias_p, user_emb, item_emb)

    # Match the PyTorch module's return tuple.
    return pred[:B, 0], u_gath[:B], i_gath[:B], u_b, i_b


def kmf_reference(users, items, params, max_score):
    u_emb = params["user_emb"][users]
    i_emb = params["item_emb"][items]
    u_b = params["user_bias"][users]
    i_b = params["item_bias"][items]
    pred = max_score * jax.nn.sigmoid(
        params["global_bias"] + i_b + u_b + jnp.sum(u_emb * i_emb, axis=1))
    return pred, u_emb, i_emb, u_b, i_b


if __name__ == "__main__":
    n_users, n_items, emb_dim, max_score = 32, 64, 32, 5

    key = jax.random.PRNGKey(0)
    k_param, k_bu, k_bi, k_u, k_i = jax.random.split(key, 5)

    params = init_kmf_params(k_param, n_users, n_items, emb_dim)
    # nn.Parameter zeros in torch; perturb so the test is non-trivial.
    params["user_bias"] = 0.05 * jax.random.normal(k_bu, (n_users,), jnp.float32)
    params["item_bias"] = 0.05 * jax.random.normal(k_bi, (n_items,), jnp.float32)
    params["global_bias"] = jnp.array([0.1], jnp.float32)

    for batch in (8, 300):
        users = jax.random.randint(k_u, (batch,), 0, n_users, dtype=jnp.int32)
        items = jax.random.randint(k_i, (batch,), 0, n_items, dtype=jnp.int32)
        ref = kmf_reference(users, items, params, max_score)

        # "auto" takes the VMEM-resident-table path here (tables are tiny);
        # "hbm" forces the chunked DMA-gather path so both are exercised.
        for mode in ("auto", "hbm"):
            out = jax.block_until_ready(
                kmf_forward(users, items, params, max_score, table_memory=mode))
            for o, r in zip(out, ref):
                assert o.shape == r.shape and o.dtype == r.dtype, (mode, batch)
                assert jnp.allclose(o, r, atol=1e-5, rtol=1e-5), (mode, batch)

    print("KERNEL_OK")
</pallas_src>

<mosaic_0001>
module attributes {stable_mosaic.version = 11 : i64} {
  func.func @kmf_vmem_kernel(%arg0: i32, %arg1: memref<16xi32, #tpu.memory_space<smem>>, %arg2: memref<16xi32, #tpu.memory_space<smem>>, %arg3: memref<8x1xf32, #tpu.memory_space<vmem>>, %arg4: memref<32x32xf32, #tpu.memory_space<vmem>>, %arg5: memref<64x32xf32, #tpu.memory_space<vmem>>, %arg6: memref<8x1xf32, #tpu.memory_space<vmem>>, %arg7: memref<8x32xf32, #tpu.memory_space<vmem>>, %arg8: memref<8x32xf32, #tpu.memory_space<vmem>>) attributes {dimension_semantics = [#tpu.dimension_semantics<parallel>], iteration_bounds = array<i64: 2>, scalar_prefetch = 2 : i64, scratch_operands = 0 : i64, tpu.core_type = #tpu.core_type<tc>, window_params = [{transform_indices = @transform_0, window_bounds = array<i64: 8, 1>}, {pipeline_mode = #tpu.pipeline_mode<synchronous>, transform_indices = @transform_1, window_bounds = array<i64: 32, 32>}, {pipeline_mode = #tpu.pipeline_mode<synchronous>, transform_indices = @transform_2, window_bounds = array<i64: 64, 32>}, {transform_indices = @transform_3, window_bounds = array<i64: 8, 1>}, {transform_indices = @transform_4, window_bounds = array<i64: 8, 32>}, {transform_indices = @transform_5, window_bounds = array<i64: 8, 32>}]} {
    %c8_i32 = arith.constant 8 : i32
    %0 = arith.muli %arg0, %c8_i32 : i32
    %c0_i32 = arith.constant 0 : i32
    %1 = arith.addi %0, %c0_i32 : i32
    %2 = arith.index_cast %1 : i32 to index
    %3 = memref.load %arg1[%2] : memref<16xi32, #tpu.memory_space<smem>>
    %4 = arith.addi %0, %c0_i32 : i32
    %5 = arith.index_cast %4 : i32 to index
    %6 = memref.load %arg2[%5] : memref<16xi32, #tpu.memory_space<smem>>
    %7 = arith.index_cast %3 : i32 to index
    %c0 = arith.constant 0 : index
    %8 = vector.load %arg4[%7, %c0] : memref<32x32xf32, #tpu.memory_space<vmem>>, vector<1x32xf32>
    %9 = arith.index_cast %c0_i32 : i32 to index
    %c0_0 = arith.constant 0 : index
    %10 = vector.load %arg7[%9, %c0_0] : memref<8x32xf32, #tpu.memory_space<vmem>>, vector<1x32xf32>
    tpu.vector_store %arg7[%9, %c0_0], %8 {strides = array<i32>} : memref<8x32xf32, #tpu.memory_space<vmem>>, vector<1x32xf32>,
    %11 = arith.index_cast %6 : i32 to index
    %c0_1 = arith.constant 0 : index
    %12 = vector.load %arg5[%11, %c0_1] : memref<64x32xf32, #tpu.memory_space<vmem>>, vector<1x32xf32>
    %13 = arith.index_cast %c0_i32 : i32 to index
    %c0_2 = arith.constant 0 : index
    %14 = vector.load %arg8[%13, %c0_2] : memref<8x32xf32, #tpu.memory_space<vmem>>, vector<1x32xf32>
    tpu.vector_store %arg8[%13, %c0_2], %12 {strides = array<i32>} : memref<8x32xf32, #tpu.memory_space<vmem>>, vector<1x32xf32>,
    %c1_i32 = arith.constant 1 : i32
    %15 = arith.addi %0, %c1_i32 : i32
    %16 = arith.index_cast %15 : i32 to index
    %17 = memref.load %arg1[%16] : memref<16xi32, #tpu.memory_space<smem>>
    %18 = arith.addi %0, %c1_i32 : i32
    %19 = arith.index_cast %18 : i32 to index
    %20 = memref.load %arg2[%19] : memref<16xi32, #tpu.memory_space<smem>>
    %21 = arith.index_cast %17 : i32 to index
    %c0_3 = arith.constant 0 : index
    %22 = vector.load %arg4[%21, %c0_3] : memref<32x32xf32, #tpu.memory_space<vmem>>, vector<1x32xf32>
    %23 = arith.index_cast %c1_i32 : i32 to index
    %c0_4 = arith.constant 0 : index
    %24 = vector.load %arg7[%23, %c0_4] : memref<8x32xf32, #tpu.memory_space<vmem>>, vector<1x32xf32>
    tpu.vector_store %arg7[%23, %c0_4], %22 {strides = array<i32>} : memref<8x32xf32, #tpu.memory_space<vmem>>, vector<1x32xf32>,
    %25 = arith.index_cast %20 : i32 to index
    %c0_5 = arith.constant 0 : index
    %26 = vector.load %arg5[%25, %c0_5] : memref<64x32xf32, #tpu.memory_space<vmem>>, vector<1x32xf32>
    %27 = arith.index_cast %c1_i32 : i32 to index
    %c0_6 = arith.constant 0 : index
    %28 = vector.load %arg8[%27, %c0_6] : memref<8x32xf32, #tpu.memory_space<vmem>>, vector<1x32xf32>
    tpu.vector_store %arg8[%27, %c0_6], %26 {strides = array<i32>} : memref<8x32xf32, #tpu.memory_space<vmem>>, vector<1x32xf32>,
    %c2_i32 = arith.constant 2 : i32
    %29 = arith.addi %0, %c2_i32 : i32
    %30 = arith.index_cast %29 : i32 to index
    %31 = memref.load %arg1[%30] : memref<16xi32, #tpu.memory_space<smem>>
    %32 = arith.addi %0, %c2_i32 : i32
    %33 = arith.index_cast %32 : i32 to index
    %34 = memref.load %arg2[%33] : memref<16xi32, #tpu.memory_space<smem>>
    %35 = arith.index_cast %31 : i32 to index
    %c0_7 = arith.constant 0 : index
    %36 = vector.load %arg4[%35, %c0_7] : memref<32x32xf32, #tpu.memory_space<vmem>>, vector<1x32xf32>
    %37 = arith.index_cast %c2_i32 : i32 to index
    %c0_8 = arith.constant 0 : index
    %38 = vector.load %arg7[%37, %c0_8] : memref<8x32xf32, #tpu.memory_space<vmem>>, vector<1x32xf32>
    tpu.vector_store %arg7[%37, %c0_8], %36 {strides = array<i32>} : memref<8x32xf32, #tpu.memory_space<vmem>>, vector<1x32xf32>,
    %39 = arith.index_cast %34 : i32 to index
    %c0_9 = arith.constant 0 : index
    %40 = vector.load %arg5[%39, %c0_9] : memref<64x32xf32, #tpu.memory_space<vmem>>, vector<1x32xf32>
    %41 = arith.index_cast %c2_i32 : i32 to index
    %c0_10 = arith.constant 0 : index
    %42 = vector.load %arg8[%41, %c0_10] : memref<8x32xf32, #tpu.memory_space<vmem>>, vector<1x32xf32>
    tpu.vector_store %arg8[%41, %c0_10], %40 {strides = array<i32>} : memref<8x32xf32, #tpu.memory_space<vmem>>, vector<1x32xf32>,
    %c3_i32 = arith.constant 3 : i32
    %43 = arith.addi %0, %c3_i32 : i32
    %44 = arith.index_cast %43 : i32 to index
    %45 = memref.load %arg1[%44] : memref<16xi32, #tpu.memory_space<smem>>
    %46 = arith.addi %0, %c3_i32 : i32
    %47 = arith.index_cast %46 : i32 to index
    %48 = memref.load %arg2[%47] : memref<16xi32, #tpu.memory_space<smem>>
    %49 = arith.index_cast %45 : i32 to index
    %c0_11 = arith.constant 0 : index
    %50 = vector.load %arg4[%49, %c0_11] : memref<32x32xf32, #tpu.memory_space<vmem>>, vector<1x32xf32>
    %51 = arith.index_cast %c3_i32 : i32 to index
    %c0_12 = arith.constant 0 : index
    %52 = vector.load %arg7[%51, %c0_12] : memref<8x32xf32, #tpu.memory_space<vmem>>, vector<1x32xf32>
    tpu.vector_store %arg7[%51, %c0_12], %50 {strides = array<i32>} : memref<8x32xf32, #tpu.memory_space<vmem>>, vector<1x32xf32>,
    %53 = arith.index_cast %48 : i32 to index
    %c0_13 = arith.constant 0 : index
    %54 = vector.load %arg5[%53, %c0_13] : memref<64x32xf32, #tpu.memory_space<vmem>>, vector<1x32xf32>
    %55 = arith.index_cast %c3_i32 : i32 to index
    %c0_14 = arith.constant 0 : index
    %56 = vector.load %arg8[%55, %c0_14] : memref<8x32xf32, #tpu.memory_space<vmem>>, vector<1x32xf32>
    tpu.vector_store %arg8[%55, %c0_14], %54 {strides = array<i32>} : memref<8x32xf32, #tpu.memory_space<vmem>>, vector<1x32xf32>,
    %c4_i32 = arith.constant 4 : i32
    %57 = arith.addi %0, %c4_i32 : i32
    %58 = arith.index_cast %57 : i32 to index
    %59 = memref.load %arg1[%58] : memref<16xi32, #tpu.memory_space<smem>>
    %60 = arith.addi %0, %c4_i32 : i32
    %61 = arith.index_cast %60 : i32 to index
    %62 = memref.load %arg2[%61] : memref<16xi32, #tpu.memory_space<smem>>
    %63 = arith.index_cast %59 : i32 to index
    %c0_15 = arith.constant 0 : index
    %64 = vector.load %arg4[%63, %c0_15] : memref<32x32xf32, #tpu.memory_space<vmem>>, vector<1x32xf32>
    %65 = arith.index_cast %c4_i32 : i32 to index
    %c0_16 = arith.constant 0 : index
    %66 = vector.load %arg7[%65, %c0_16] : memref<8x32xf32, #tpu.memory_space<vmem>>, vector<1x32xf32>
    tpu.vector_store %arg7[%65, %c0_16], %64 {strides = array<i32>} : memref<8x32xf32, #tpu.memory_space<vmem>>, vector<1x32xf32>,
    %67 = arith.index_cast %62 : i32 to index
    %c0_17 = arith.constant 0 : index
    %68 = vector.load %arg5[%67, %c0_17] : memref<64x32xf32, #tpu.memory_space<vmem>>, vector<1x32xf32>
    %69 = arith.index_cast %c4_i32 : i32 to index
    %c0_18 = arith.constant 0 : index
    %70 = vector.load %arg8[%69, %c0_18] : memref<8x32xf32, #tpu.memory_space<vmem>>, vector<1x32xf32>
    tpu.vector_store %arg8[%69, %c0_18], %68 {strides = array<i32>} : memref<8x32xf32, #tpu.memory_space<vmem>>, vector<1x32xf32>,
    %c5_i32 = arith.constant 5 : i32
    %71 = arith.addi %0, %c5_i32 : i32
    %72 = arith.index_cast %71 : i32 to index
    %73 = memref.load %arg1[%72] : memref<16xi32, #tpu.memory_space<smem>>
    %74 = arith.addi %0, %c5_i32 : i32
    %75 = arith.index_cast %74 : i32 to index
    %76 = memref.load %arg2[%75] : memref<16xi32, #tpu.memory_space<smem>>
    %77 = arith.index_cast %73 : i32 to index
    %c0_19 = arith.constant 0 : index
    %78 = vector.load %arg4[%77, %c0_19] : memref<32x32xf32, #tpu.memory_space<vmem>>, vector<1x32xf32>
    %79 = arith.index_cast %c5_i32 : i32 to index
    %c0_20 = arith.constant 0 : index
    %80 = vector.load %arg7[%79, %c0_20] : memref<8x32xf32, #tpu.memory_space<vmem>>, vector<1x32xf32>
    tpu.vector_store %arg7[%79, %c0_20], %78 {strides = array<i32>} : memref<8x32xf32, #tpu.memory_space<vmem>>, vector<1x32xf32>,
    %81 = arith.index_cast %76 : i32 to index
    %c0_21 = arith.constant 0 : index
    %82 = vector.load %arg5[%81, %c0_21] : memref<64x32xf32, #tpu.memory_space<vmem>>, vector<1x32xf32>
    %83 = arith.index_cast %c5_i32 : i32 to index
    %c0_22 = arith.constant 0 : index
    %84 = vector.load %arg8[%83, %c0_22] : memref<8x32xf32, #tpu.memory_space<vmem>>, vector<1x32xf32>
    tpu.vector_store %arg8[%83, %c0_22], %82 {strides = array<i32>} : memref<8x32xf32, #tpu.memory_space<vmem>>, vector<1x32xf32>,
    %c6_i32 = arith.constant 6 : i32
    %85 = arith.addi %0, %c6_i32 : i32
    %86 = arith.index_cast %85 : i32 to index
    %87 = memref.load %arg1[%86] : memref<16xi32, #tpu.memory_space<smem>>
    %88 = arith.addi %0, %c6_i32 : i32
    %89 = arith.index_cast %88 : i32 to index
    %90 = memref.load %arg2[%89] : memref<16xi32, #tpu.memory_space<smem>>
    %91 = arith.index_cast %87 : i32 to index
    %c0_23 = arith.constant 0 : index
    %92 = vector.load %arg4[%91, %c0_23] : memref<32x32xf32, #tpu.memory_space<vmem>>, vector<1x32xf32>
    %93 = arith.index_cast %c6_i32 : i32 to index
    %c0_24 = arith.constant 0 : index
    %94 = vector.load %arg7[%93, %c0_24] : memref<8x32xf32, #tpu.memory_space<vmem>>, vector<1x32xf32>
    tpu.vector_store %arg7[%93, %c0_24], %92 {strides = array<i32>} : memref<8x32xf32, #tpu.memory_space<vmem>>, vector<1x32xf32>,
    %95 = arith.index_cast %90 : i32 to index
    %c0_25 = arith.constant 0 : index
    %96 = vector.load %arg5[%95, %c0_25] : memref<64x32xf32, #tpu.memory_space<vmem>>, vector<1x32xf32>
    %97 = arith.index_cast %c6_i32 : i32 to index
    %c0_26 = arith.constant 0 : index
    %98 = vector.load %arg8[%97, %c0_26] : memref<8x32xf32, #tpu.memory_space<vmem>>, vector<1x32xf32>
    tpu.vector_store %arg8[%97, %c0_26], %96 {strides = array<i32>} : memref<8x32xf32, #tpu.memory_space<vmem>>, vector<1x32xf32>,
    %c7_i32 = arith.constant 7 : i32
    %99 = arith.addi %0, %c7_i32 : i32
    %100 = arith.index_cast %99 : i32 to index
    %101 = memref.load %arg1[%100] : memref<16xi32, #tpu.memory_space<smem>>
    %102 = arith.addi %0, %c7_i32 : i32
    %103 = arith.index_cast %102 : i32 to index
    %104 = memref.load %arg2[%103] : memref<16xi32, #tpu.memory_space<smem>>
    %105 = arith.index_cast %101 : i32 to index
    %c0_27 = arith.constant 0 : index
    %106 = vector.load %arg4[%105, %c0_27] : memref<32x32xf32, #tpu.memory_space<vmem>>, vector<1x32xf32>
    %107 = arith.index_cast %c7_i32 : i32 to index
    %c0_28 = arith.constant 0 : index
    %108 = vector.load %arg7[%107, %c0_28] : memref<8x32xf32, #tpu.memory_space<vmem>>, vector<1x32xf32>
    tpu.vector_store %arg7[%107, %c0_28], %106 {strides = array<i32>} : memref<8x32xf32, #tpu.memory_space<vmem>>, vector<1x32xf32>,
    %109 = arith.index_cast %104 : i32 to index
    %c0_29 = arith.constant 0 : index
    %110 = vector.load %arg5[%109, %c0_29] : memref<64x32xf32, #tpu.memory_space<vmem>>, vector<1x32xf32>
    %111 = arith.index_cast %c7_i32 : i32 to index
    %c0_30 = arith.constant 0 : index
    %112 = vector.load %arg8[%111, %c0_30] : memref<8x32xf32, #tpu.memory_space<vmem>>, vector<1x32xf32>
    tpu.vector_store %arg8[%111, %c0_30], %110 {strides = array<i32>} : memref<8x32xf32, #tpu.memory_space<vmem>>, vector<1x32xf32>,
    %c8_i32_31 = arith.constant 8 : i32
    %c0_32 = arith.constant 0 : index
    %c0_33 = arith.constant 0 : index
    %113 = vector.load %arg7[%c0_32, %c0_33] : memref<8x32xf32, #tpu.memory_space<vmem>>, vector<8x32xf32>
    %c0_34 = arith.constant 0 : index
    %c0_35 = arith.constant 0 : index
    %114 = vector.load %arg8[%c0_34, %c0_35] : memref<8x32xf32, #tpu.memory_space<vmem>>, vector<8x32xf32>
    %115 = arith.mulf %113, %114 : vector<8x32xf32>
    %cst = arith.constant dense<0.000000e+00> : vector<8xf32>
    %116 = vector.multi_reduction <add>, %115, %cst [1] : vector<8x32xf32> to vector<8xf32>
    %117 = vector.shape_cast %116 : vector<8xf32> to vector<8x1xf32>
    %c0_36 = arith.constant 0 : index
    %c0_37 = arith.constant 0 : index
    %118 = vector.load %arg3[%c0_36, %c0_37] : memref<8x1xf32, #tpu.memory_space<vmem>>, vector<8x1xf32>
    %119 = arith.addf %118, %117 : vector<8x1xf32>
    %120 = arith.negf %119 : vector<8x1xf32>
    %121 = math.exp %120 : vector<8x1xf32>
    %cst_38 = arith.constant 1.000000e+00 : f32
    %122 = vector.broadcast %cst_38 : f32 to vector<8x1xf32>
    %123 = arith.addf %122, %121 : vector<8x1xf32>
    %124 = arith.divf %122, %123 : vector<8x1xf32>
    %cst_39 = arith.constant 5.000000e+00 : f32
    %125 = vector.broadcast %cst_39 : f32 to vector<8x1xf32>
    %126 = arith.mulf %125, %124 : vector<8x1xf32>
    %c0_40 = arith.constant 0 : index
    %c0_41 = arith.constant 0 : index
    %127 = vector.load %arg6[%c0_40, %c0_41] : memref<8x1xf32, #tpu.memory_space<vmem>>, vector<8x1xf32>
    tpu.vector_store %arg6[%c0_40, %c0_41], %126 {strides = array<i32>} : memref<8x1xf32, #tpu.memory_space<vmem>>, vector<8x1xf32>,
    return
  }
  func.func @transform_0(%arg0: i32, %arg1: memref<16xi32, #tpu.memory_space<smem>>, %arg2: memref<16xi32, #tpu.memory_space<smem>>) -> (i32, i32) {
    %c0_i32 = arith.constant 0 : i32
    %c0_i32_0 = arith.constant 0 : i32
    return %arg0, %c0_i32 : i32, i32
  }
  func.func @transform_1(%arg0: i32, %arg1: memref<16xi32, #tpu.memory_space<smem>>, %arg2: memref<16xi32, #tpu.memory_space<smem>>) -> (i32, i32) {
    %c0_i32 = arith.constant 0 : i32
    %c0_i32_0 = arith.constant 0 : i32
    %c0_i32_1 = arith.constant 0 : i32
    return %c0_i32, %c0_i32_0 : i32, i32
  }
  func.func @transform_2(%arg0: i32, %arg1: memref<16xi32, #tpu.memory_space<smem>>, %arg2: memref<16xi32, #tpu.memory_space<smem>>) -> (i32, i32) {
    %c0_i32 = arith.constant 0 : i32
    %c0_i32_0 = arith.constant 0 : i32
    %c0_i32_1 = arith.constant 0 : i32
    return %c0_i32, %c0_i32_0 : i32, i32
  }
  func.func @transform_3(%arg0: i32, %arg1: memref<16xi32, #tpu.memory_space<smem>>, %arg2: memref<16xi32, #tpu.memory_space<smem>>) -> (i32, i32) {
    %c0_i32 = arith.constant 0 : i32
    %c0_i32_0 = arith.constant 0 : i32
    return %arg0, %c0_i32 : i32, i32
  }
  func.func @transform_4(%arg0: i32, %arg1: memref<16xi32, #tpu.memory_space<smem>>, %arg2: memref<16xi32, #tpu.memory_space<smem>>) -> (i32, i32) {
    %c0_i32 = arith.constant 0 : i32
    %c0_i32_0 = arith.constant 0 : i32
    return %arg0, %c0_i32 : i32, i32
  }
  func.func @transform_5(%arg0: i32, %arg1: memref<16xi32, #tpu.memory_space<smem>>, %arg2: memref<16xi32, #tpu.memory_space<smem>>) -> (i32, i32) {
    %c0_i32 = arith.constant 0 : i32
    %c0_i32_0 = arith.constant 0 : i32
    return %arg0, %c0_i32 : i32, i32
  }
}

</mosaic_0001>

<bundles_post_ra>
// kernel: tpu_custom_call.1
= control target key start
LH: loop header
LB: loop body
LE: loop exit
PB: predicated region body
PF: predicated region fallthrough
CT: control target
= control target key end

     0   :  { %s983_s0 = inlined_call_operand.vmem [shape: s32[16], index: 0, kind: input, shape index: {}]   ;;  %s984_s2 = inlined_call_operand.vmem [shape: f32[16,1], index: 2, kind: input, shape index: {}]   ;;  %s985_s3 = inlined_call_operand.vmem [shape: f32[32,32], index: 3, kind: input, shape index: {}]   ;;  %s986_s4 = inlined_call_operand.vmem [shape: f32[64,32], index: 4, kind: input, shape index: {}]   ;;  %s987_s5 = inlined_call_operand.vmem [shape: f32[16,1], index: 5, kind: output, shape index: {0}]   ;;  %s988_s6 = inlined_call_operand.hbm [shape: f32[16,32], index: 6, kind: output, shape index: {1}]   ;;  %s989_s7 = inlined_call_operand.hbm [shape: f32[16,32], index: 7, kind: output, shape index: {2}]   ;;  %s990_s1 = inlined_call_operand.vmem [shape: s32[16], index: 1, kind: input, shape index: {}]  }
   0x1   :  { %s13_s26 = sshll.u32 %s983_s0, 4  ;;  %s17_s29 = sshll.u32 %s990_s1, 4  ;;  %s14_s26 = int_to_ptr.vmem [resolvable:$true] %s13_s26  ;;  %s18_s29 = int_to_ptr.vmem [resolvable:$true] %s17_s29 }
   0x2   :  { %s580_s30 = scalar_lea.vmem %s14_s26, 16  ;;  %p585_p1 = scmp.lt.s32.totalorder %s14_s26, %s14_s26 }
   0x3   :  { %p581_p0 = scmp.ne.s32.totalorder %s14_s26, %s580_s30  ;;  %p586_p2 = scmp.lt.s32.totalorder %s580_s30, %s580_s30 }
   0x5   :  { %p587_p3 = por %p586_p2, %p585_p1 }
   0x7   :  { %p588_p4 = pnand %p587_p3, %p581_p0 }
   0x9   :  { %591 = shalt.err (!%p588_p4)  }
   0xa   :  { %s702_s8 = smov [#allocation3]   ;;  %s592_s9 = scalar_lea.vmem %s18_s29, 16 }
   0xb   :  { %16 = dma.vmem_to_smem %s14_s26, 16, %s702_s8, [#allocation2] }
   0xc   :  { %p593_p5 = scmp.ne.s32.totalorder %s18_s29, %s592_s9  ;;  %p597_p6 = scmp.lt.s32.totalorder %s18_s29, %s18_s29 }
   0xd   :  { %p598_p7 = scmp.lt.s32.totalorder %s592_s9, %s592_s9 }
   0xf   :  { %p599_p8 = por %p598_p7, %p597_p6 }
  0x11   :  { %p600_p9 = pnand %p599_p8, %p593_p5 }
  0x13   :  { %603 = shalt.err (!%p600_p9)  }
  0x14   :  { %s703_s0 = smov [#allocation4]  }
  0x15   :  { %20 = dma.vmem_to_smem %s18_s29, 16, %s703_s0, [#allocation2] }
  0x16   :  { %676 = dma.done.wait [#allocation2], 32 }
  0x17   :  { %677 = vsyncadd [#allocation2], 4294967264 }
  0x18   :  { %22 = sfence }
  0x19   :  { %23 = vsyncpa [#allocation6], 0 }
  0x1a   :  { %25 = vsyncpa [#allocation6 + $0x1], 0 }
  0x1b   :  { %26 = vsyncpa [#allocation8], 0 }
  0x1c   :  { %28 = vsyncpa [#allocation8 + $0x1], 0  ;;  %s752_s1 = smov 0   ;;  %s754_s10 = smov 0  }
  0x1d   :  { %s756_s11 = smov 0   ;;  %s758_s12 = smov 0  }
  0x1e LB: > { %998 = sst [smem:[#allocation12_spill]] %s688_s1  ;;  %s773_s13 = sadd.s32 4294967295, %s700_s12   ;;  %s700_s12 = sphi %s758_s12, %s1010_s12   ;;  %s696_s11 = sphi %s756_s11, %s1013_s11   ;;  %s692_s10 = sphi %s754_s10, %s1012_s10   ;;  %s688_s1 = sphi %s752_s1, %s1011_s1  }
  0x1f   : > { %999 = sst [smem:[#allocation13_spill]] %s692_s10  ;;  %s514_s14 = sadd.s32 4294967294, %s700_s12  }
  0x20   : > { %1000 = sst [smem:[#allocation14_spill]] %s696_s11  ;;  %s777_s15 = sadd.s32 1, %s700_s12  }
  0x21   : > { %1001 = sst [smem:[#allocation15_spill]] %s700_s12  ;;  %s135_s16 = sadd.s32 1, %s696_s11 }
  0x22   : > { %1002 = sst [smem:[#allocation16_spill]] %s777_s15  ;;  %s132_s17 = ssub.s32 %s700_s12, %s777_s15 }
  0x23   : > { %p145_p10 = scmp.ne.s32.totalorder %s696_s11, %s692_s10  ;;  %p133_p11 = scmp.eq.s32.totalorder %s132_s17, 0 }
  0x24   : > { %p146_p12 = scmp.eq.s32.totalorder %s773_s13, 1  ;;  %p151_p13 = scmp.ne.s32.totalorder %s692_s10, %s688_s1 }
  0x25   : > { %p152_p0 = scmp.eq.s32.totalorder %s514_s14, 1  ;;  %p517_p3 = scmp.ge.s32.totalorder %s700_s12, 1 }
  0x26   : > { %s788_s18 = scalar_select %p133_p11, %s696_s11, %s135_s16  }
  0x27   : > { %p790_p1 = por %p146_p12, %p145_p10  ;;  %p794_p2 = por %p152_p0, %p151_p13 }
  0x28   : > { %1003 = sst [smem:[#allocation17_spill]] %s788_s18  ;;  %p209_p4 = scmp.lt.s32.totalorder %s700_s12, 3 }
  0x29   : > { %s1005_s20 = scalar_select %p794_p2, 1, 0 }
  0x2a   : > { %p210_p5 = pnand %p517_p3, %p209_p4 }
  0x2b   : > { %1006 = sst [smem:[#allocation18_spill]] %s1005_s20  ;;  %s801_s21 = sand.u32 (!%p210_p5), 1, %s692_s10   ;;  %vm258_vm0 = vcmask (!%p210_p5), 253952   ;;  %vm329_vm1 = vcmask (!%p210_p5), 261120  }
  0x2c   : > { %213 = sbr.rel (%p210_p5) target bundleno = 255 (0xff), region = 32  ;;  %s804_s22 = sshll.u32 (!%p210_p5), %s773_s13, 3 }
  0x2d   : > { %s518_s23 = sshll.u32 (!%p210_p5), %s801_s21, 3  ;;  %s254_s24 = sld [smem:[#allocation3 + %s804_s22]] (!%p210_p5) }
  0x2e   : > { %s255_s25 = sld [smem:[#allocation4 + %s804_s22]] (!%p210_p5)  ;;  %s263_s26 = sadd.s32 (!%p210_p5), 1, %s804_s22 }
  0x2f   : > { %s264_s27 = sld [smem:[#allocation3 + %s263_s26]] (!%p210_p5)  ;;  %s272_s29 = sadd.s32 (!%p210_p5), 2, %s804_s22 }
  0x30   : > { %s265_s28 = sld [smem:[#allocation4 + %s263_s26]] (!%p210_p5)  ;;  %s281_s30 = sadd.s32 (!%p210_p5), 3, %s804_s22 }
  0x31   : > { %s273_s8 = sld [smem:[#allocation3 + %s272_s29]] (!%p210_p5)  ;;  %s290_s11 = sadd.s32 (!%p210_p5), 4, %s804_s22 }
  0x32   : > { %s274_s9 = sld [smem:[#allocation4 + %s272_s29]] (!%p210_p5)  ;;  %s818_s10 = scalar_lea.vmem (!%p210_p5), [#allocation5], %s518_s23 }
  0x33   : > { %s256_s16 = scalar_lea.vmem %s985_s3, %s254_s24  ;;  %s282_s17 = sld [smem:[#allocation3 + %s281_s30]] }
  0x34   : > { %v257_v0 = vld [vmem:[%s256_s16] sm:$0x1]  ;;  %s815_s18 = sld [smem:[#allocation4 + %s281_s30]]  ;;  %s260_s29 = scalar_lea.vmem %s986_s4, %s255_s25 }
  0x35   : > { %259 = vst.msk [vmem:[%s818_s10] sm:$0x1] %vm258_vm0, %v257_v0  ;;  %s291_s20 = sld [smem:[#allocation3 + %s290_s11]]  ;;  %v261_v1 = vld [vmem:[%s260_s29] sm:$0x1]  ;;  %s266_s14 = scalar_lea.vmem %s985_s3, %s264_s27 }
  0x36   : > { %s269_s1 = scalar_lea.vmem %s986_s4, %s265_s28  ;;  %s831_s12 = scalar_lea.vmem [#allocation7], %s518_s23  ;;  %v267_v2 = vld [vmem:[%s266_s14] sm:$0x1] }
  0x37   : > { %262 = vst.msk [vmem:[%s831_s12] sm:$0x1] %vm258_vm0, %v261_v1  ;;  %v270_v3 = vld [vmem:[%s269_s1] sm:$0x1]  ;;  %s292_s15 = sld [smem:[#allocation4 + %s290_s11]]  ;;  %s299_s25 = sadd.s32 5, %s804_s22 }
  0x38   : > { %268 = vst.msk [vmem:[%s818_s10 + $0x1] sm:$0x1] %vm258_vm0, %v267_v2  ;;  %271 = vst.msk [vmem:[%s831_s12 + $0x1] sm:$0x1] %vm258_vm0, %v270_v3  ;;  %s275_s23 = scalar_lea.vmem %s985_s3, %s273_s8  ;;  %s278_s0 = scalar_lea.vmem %s986_s4, %s274_s9 }
  0x39   : > { %v276_v4 = vld [vmem:[%s275_s23] sm:$0x1]  ;;  %s284_s11 = scalar_lea.vmem %s985_s3, %s282_s17  ;;  %s300_s14 = sld [smem:[#allocation3 + %s299_s25]] }
  0x3a   : > { %v279_v5 = vld [vmem:[%s278_s0] sm:$0x1]  ;;  %277 = vst.msk [vmem:[%s818_s10 + $0x2] sm:$0x1] %vm258_vm0, %v276_v4  ;;  %s287_s30 = scalar_lea.vmem %s986_s4, %s815_s18  ;;  %s301_s9 = sld [smem:[#allocation4 + %s299_s25]] }
  0x3b   : > { %280 = vst.msk [vmem:[%s831_s12 + $0x2] sm:$0x1] %vm258_vm0, %v279_v5  ;;  %v285_v6 = vld [vmem:[%s284_s11] sm:$0x1]  ;;  %s293_s17 = scalar_lea.vmem %s985_s3, %s291_s20  ;;  %s308_s23 = sadd.s32 6, %s804_s22 }
  0x3c   : > { %286 = vst.msk [vmem:[%s818_s10 + $0x3] sm:$0x1] %vm258_vm0, %v285_v6  ;;  %v288_v7 = vld [vmem:[%s287_s30] sm:$0x1]  ;;  %s309_s26 = sld [smem:[#allocation3 + %s308_s23]]  ;;  %s317_s1 = sadd.s32 7, %s804_s22 }
  0x3d   : > { %289 = vst.msk [vmem:[%s831_s12 + $0x3] sm:$0x1] %vm258_vm0, %v288_v7  ;;  %v294_v8 = vld [vmem:[%s293_s17] sm:$0x1]  ;;  %s310_s29 = sld [smem:[#allocation4 + %s308_s23]]  ;;  %s296_s25 = scalar_lea.vmem %s986_s4, %s292_s15 }
  0x3e   : > { %295 = vst.msk [vmem:[%s818_s10 + $0x4] sm:$0x1] %vm258_vm0, %v294_v8  ;;  %v297_v9 = vld [vmem:[%s296_s25] sm:$0x1]  ;;  %s318_s24 = sld [smem:[#allocation3 + %s317_s1]]  ;;  %s349_s30 = scalar_lea.sflag [#allocation6], %s801_s21 }
  0x3f   : > { %s319_s20 = sld [smem:[#allocation4 + %s317_s1]]  ;;  %298 = vst.msk [vmem:[%s831_s12 + $0x4] sm:$0x1] %vm258_vm0, %v297_v9  ;;  %s302_s8 = scalar_lea.vmem %s985_s3, %s300_s14 }
  0x40   : > { %v303_v10 = vld [vmem:[%s302_s8] sm:$0x1]  ;;  %s305_s28 = scalar_lea.vmem %s986_s4, %s301_s9 }
  0x41   : > { %304 = vst.msk [vmem:[%s818_s10 + $0x5] sm:$0x1] %vm258_vm0, %v303_v10  ;;  %v306_v11 = vld [vmem:[%s305_s28] sm:$0x1]  ;;  %s704_s28 = smov [#allocation5]  }
  0x42   : > { %307 = vst.msk [vmem:[%s831_s12 + $0x5] sm:$0x1] %vm258_vm0, %v306_v11  ;;  %s311_s17 = scalar_lea.vmem %s985_s3, %s309_s26  ;;  %s608_s22 = sshll.u32 %s704_s28, 4  ;;  %s609_s22 = int_to_ptr.vmem [resolvable:$false] %s608_s22 }
  0x43   : > { %s314_s18 = scalar_lea.vmem %s986_s4, %s310_s29  ;;  %v312_v12 = vld [vmem:[%s311_s17] sm:$0x1]  ;;  %s526_s29 = sshll.u32 %s773_s13, 7 }
  0x44   : > { %v315_v13 = vld [vmem:[%s314_s18] sm:$0x1]  ;;  %313 = vst.msk [vmem:[%s818_s10 + $0x6] sm:$0x1] %vm258_vm0, %v312_v12  ;;  %s320_s25 = scalar_lea.vmem %s985_s3, %s318_s24  ;;  %s370_s24 = sshll.u32 %s818_s10, 4  ;;  %s371_s24 = int_to_ptr.vmem [resolvable:$true] %s370_s24 }
  0x45   : > { %316 = vst.msk [vmem:[%s831_s12 + $0x6] sm:$0x1] %vm258_vm0, %v315_v13  ;;  %s323_s26 = scalar_lea.vmem %s986_s4, %s319_s20  ;;  %v321_v14 = vld [vmem:[%s320_s25] sm:$0x1]  ;;  %s912_s20 = scalar_lea.hbm %s988_s6, %s526_s29 }
  0x46   : > { %v324_v15 = vld [vmem:[%s323_s26] sm:$0x1]  ;;  %322 = vst.msk [vmem:[%s818_s10 + $0x7] sm:$0x1] %vm258_vm0, %v321_v14  ;;  %s604_s27 = scalar_lea.vmem %s371_s24, 128  ;;  %s610_s15 = scalar_lea.vmem %s609_s22, 256 }
  0x47   : > { %325 = vst.msk [vmem:[%s831_s12 + $0x7] sm:$0x1] %vm258_vm0, %v324_v15  ;;  %p605_p6 = scmp.ne.s32.totalorder %s371_s24, %s604_s27  ;;  %p611_p9 = scmp.lt.s32.totalorder %s371_s24, %s609_s22 }
  0x48   : > { %p612_p10 = scmp.lt.s32.totalorder %s610_s15, %s604_s27 }
  0x49   : > { %p606_p7 = pnand %p605_p6, %p790_p1 }
  0x4a   : > { %p613_p11 = por %p612_p10, %p611_p9 }
  0x4b   : > { %p607_p8 = pneg %p606_p7 }
  0x4d   : > { %v326_v16 = vld [vmem:[%s818_s10] sm:$0xff]  ;;  %p614_p12 = pnand %p613_p11, %p607_p8 }
  0x4e   : > { %v327_v17 = vld [vmem:[%s831_s12] sm:$0xff] }
  0x4f   : > { %v328_v18 = vmul.f32 %v327_v17, %v326_v16 }
  0x51   : > { %v330_v19 = vsel %vm329_vm1, %v328_v18, 0.0 }
  0x52   : > { %331 = vadd.xlane.f32.xlu0 %v330_v19 }
  0x53   : > { %617 = shalt.err (!%p614_p12)
}
  0x54   : > { %s618_s10 = scalar_lea.hbm %s912_s20, 128  ;;  %s622_s14 = scalar_lea.hbm %s988_s6, 256 }
  0x55   : > { %p619_p13 = scmp.ne.s32.totalorder %s912_s20, %s618_s10  ;;  %p623_p4 = scmp.lt.u32.totalorder %s912_s20, %s988_s6 }
  0x56   : > { %p624_p5 = scmp.lt.u32.totalorder %s622_s14, %s618_s10  ;;  %p626_p7 = scmp.lt.u32.totalorder %s618_s10, %s912_s20 }
  0x57   : > { %p620_p0 = pnand %p619_p13, %p790_p1 }
  0x58   : > { %p625_p6 = por %p624_p5, %p623_p4 }
  0x59   : > { %p621_p3 = pneg %p620_p0 }
  0x5a   : > { %p627_p8 = por %p626_p7, %p625_p6 }
  0x5c   : > { %p628_p9 = pnand %p627_p8, %p621_p3 }
  0x5e   : > { %631 = shalt.err (!%p628_p9)
}
  0x5f   : > { %530 = dma.vmem_to_hbm [thread:$0]  (%p790_p1), %s371_s24, 128, %s912_s20, %s349_s30  }
  0x60   : > { %s937_s1 = scalar_lea.hbm %s989_s7, %s526_s29  ;;  %s383_s11 = sshll.u32 %s831_s12, 4  ;;  %s384_s11 = int_to_ptr.vmem [resolvable:$true] %s383_s11 }
  0x61   : > { %s354_s26 = scalar_lea.sflag [#allocation8], %s801_s21  ;;  %s632_s16 = scalar_lea.vmem %s384_s11, 128 }
  0x62   : > { %p633_p10 = scmp.ne.s32.totalorder %s384_s11, %s632_s16  ;;  %s705_s8 = smov [#allocation7]  }
  0x63   : > { %s636_s27 = sshll.u32 %s705_s8, 4  ;;  %s637_s27 = int_to_ptr.vmem [resolvable:$false] %s636_s27 }
  0x64   : > { %p634_p11 = pnand %p633_p10, %p790_p1  ;;  %s638_s28 = scalar_lea.vmem %s637_s27, 256 }
  0x65   : > { %p639_p13 = scmp.lt.s32.totalorder %s384_s11, %s637_s27  ;;  %p640_p0 = scmp.lt.s32.totalorder %s638_s28, %s632_s16 }
  0x66   : > { %p635_p12 = pneg %p634_p11 }
  0x67   : > { %p641_p3 = por %p640_p0, %p639_p13 }
  0x69   : > { %p642_p4 = pnand %p641_p3, %p635_p12 }
  0x6b   : > { %645 = shalt.err (!%p642_p4)
}
  0x6c   : > { %s646_s12 = scalar_lea.hbm %s937_s1, 128  ;;  %s650_s24 = scalar_lea.hbm %s989_s7, 256 }
  0x6d   : > { %p647_p5 = scmp.ne.s32.totalorder %s937_s1, %s646_s12  ;;  %p651_p8 = scmp.lt.u32.totalorder %s937_s1, %s989_s7 }
  0x6e   : > { %p652_p9 = scmp.lt.u32.totalorder %s650_s24, %s646_s12  ;;  %p654_p11 = scmp.lt.u32.totalorder %s646_s12, %s937_s1 }
  0x6f   : > { %p648_p6 = pnand %p647_p5, %p790_p1 }
  0x70   : > { %p653_p10 = por %p652_p9, %p651_p8 }
  0x71   : > { %p649_p7 = pneg %p648_p6 }
  0x72   : > { %p655_p12 = por %p654_p11, %p653_p10 }
  0x74   : > { %p656_p13 = pnand %p655_p12, %p649_p7 }
  0x76   : > { %659 = shalt.err (!%p656_p13)
}
  0x77   : > { %531 = dma.vmem_to_hbm [thread:$0]  (%p790_p1), %s384_s11, 128, %s937_s1, %s354_s26   ;;  %vm342_vm2 = vcmask 7168  }
  0x78   : > { %p245_p0 = scmp.lt.s32.totalorder %s773_s13, 1 }
  0x7a   : > { %s1015_s13 = smov (!%p245_p0, %s773_s13), 1 }
  0x7b   : > { %s520_s22 = sshll.u32 %s1015_s13, 3 }
  0x7c   : > { %s248_s17 = scalar_lea.vmem %s984_s2, %s520_s22  ;;  %s252_s14 = scalar_lea.vmem %s987_s5, %s520_s22 }
  0x7d   : > { %v333_v20 = vld [vmem:[%s248_s17] sm:$0xff] }
  0xdf   : > { %v332_v21 = vpop.xlane.xlu0 %331 }
  0xe0   : > { %v334_v22 = vadd.f32 %v333_v20, %v332_v21 }
  0xe2   : > { %v523_v23 = vmul.f32 -1.442695, %v334_v22 }
  0xe4   : > { %576 = vpow2.f32 %v523_v23 }
  0xee   : > { %v577_v24 = vpop.eup %576 }
  0xef   : > { %v338_v25 = vadd.f32 1.0, %v577_v24 }
  0xf1   : > { %578 = vrcp.f32 %v338_v25 }
  0xfb   : > { %v579_v26 = vpop.eup %578 }
  0xfc   : > { %v341_v27 = vmul.f32 5.0, %v579_v26 }
  0xfe   : > { %343 = vst.msk [vmem:[%s252_s14] sm:$0xff] %vm342_vm2, %v341_v27 }
  0xff PF: > { %s1007_s13 = sld [smem:[#allocation15_spill]]  ;;  %s1008_s18 = sld [smem:[#allocation12_spill]] }
 0x105   : > { %p541_p1 = scmp.ge.s32.totalorder %s1007_s13, 2  ;;  %s402_s0 = sand.u32 1, %s1008_s18  }
 0x106   : > { %s403_s25 = scalar_lea.sflag [#allocation6], %s402_s0 }
 0x107   : > { %p535_p3 = pnand %p541_p1, %p794_p2 }
 0x109   : > { %679 = dma.done.wait (!%p535_p3), %s403_s25, 128  }
 0x10a   : > { %681 = vsyncadd (!%p535_p3), %s403_s25, 4294967168  ;;  %s412_s1 = scalar_lea.sflag [#allocation8], %s402_s0 }
 0x10b   : > { %683 = dma.done.wait (!%p535_p3), %s412_s1, 128  }
 0x10c   : > { %685 = vsyncadd (!%p535_p3), %s412_s1, 4294967168  ;;  %s1010_s12 = sld [smem:[#allocation16_spill]]  ;;  %s1011_s1 = sld [smem:[#allocation13_spill]] }
 0x10d   : > { %s1012_s10 = sld [smem:[#allocation14_spill]]  ;;  %s1013_s11 = sld [smem:[#allocation17_spill]] }
 0x112   : > { %p31_p4 = scmp.ge.s32.totalorder %s1010_s12, 4  }
 0x114   :  { %33 = sbr.rel (!%p31_p4) target bundleno = 30 (0x1e), region = 112 }
 0x11b   :  { %417 = vsyncpa [#allocation6], 1 }
 0x11c   :  { %419 = vsyncpa [#allocation6 + $0x1], 1 }
 0x11d   :  { %420 = vsyncpa [#allocation8], 1 }
 0x11e   :  { %422 = vsyncpa [#allocation8 + $0x1], 1 }

</bundles_post_ra>
